<compile_context>
chip_gen: v7x
topology: tpu7x:2x2x1
jax: 0.10.0
libtpu: 0.0.40
codegen_flags: <defaults>
</compile_context>

<pallas_src>
import jax
import jax.numpy as jnp
from jax.experimental import pallas as pl
from jax.experimental.pallas import tpu as pltpu


# ----------------------------------------------------------------------------
# Kernel
# ----------------------------------------------------------------------------
def _graph_attention_k_kernel(q_ref, k_ref, v_ref, adj_ref, s_ref, o_ref,
                              wq_ref, wk_ref, b_ref, wr_ref,
                              attn_ref, out_ref):
    """GraphAttentionK.forward for one batch block.

    q_ref        : (bb, D)      Q
    k_ref, v_ref : (bb, N, D)   K, V
    adj/s/o      : (bb, N)      adjacency / same-speaker / other-speaker masks
    wq_ref/wk_ref: (1, D)       halves of nn.Linear(2D, 1).weight (pre-split)
    b_ref        : (1, 1)       nn.Linear(2D, 1).bias
    wr_ref       : (2D, D)      [Wr0.weight.T ; Wr1.weight.T] stacked
    attn_ref     : (bb, N)      output: softmax attention weights
    out_ref      : (bb, D)      output: attention-weighted sum
    """
    q = q_ref[...]                                             # (bb, D)
    k = k_ref[...]                                             # (bb, N, D)
    v = v_ref[...]                                             # (bb, N, D)
    d = q.shape[-1]

    # alpha[b, j] = [Q_b, K_bj] . w + bias = Q_b.wq + K_bj.wk + bias
    # VPU multiply + lane-reduce (no 1-row MXU push/pop latency).
    qs = jnp.sum(q * wq_ref[...], axis=-1, keepdims=True)      # (bb, 1)
    ks = jnp.sum(k * wk_ref[...].reshape(1, 1, d), axis=-1)    # (bb, N)
    alpha = qs + ks + b_ref[...]                               # (bb, N)

    # TODO(synk): mask_logic is not defined in the reference source; assuming
    #             mask_logic(alpha, adj) = alpha - (1 - adj) * 1e30.
    alpha = alpha - (1.0 - adj_ref[...]) * 1e30

    # Numerically-stable softmax over neighbors (dim=2 in the PyTorch module).
    amax = jnp.max(alpha, axis=-1, keepdims=True)
    e = jnp.exp(alpha - amax)
    attn = e / jnp.sum(e, axis=-1, keepdims=True)              # (bb, N)
    attn_ref[...] = attn

    # attn @ (Wr0(V)*s + Wr1(V)*o)  as one packed MXU matmul.
    ws = (attn * s_ref[...])[..., None]                        # (bb, N, 1)
    wo = (attn * o_ref[...])[..., None]                        # (bb, N, 1)
    a0 = jnp.sum(ws * v, axis=1)                               # (bb, D)
    a1 = jnp.sum(wo * v, axis=1)                               # (bb, D)
    a = jnp.concatenate([a0, a1], axis=-1)                     # (bb, 2D)
    out_ref[...] = jnp.dot(a, wr_ref[...],
                           preferred_element_type=jnp.float32)  # (bb, D)


# ----------------------------------------------------------------------------
# Wrapper
# ----------------------------------------------------------------------------
def graph_attention_k(q, k, v, adj, s_mask, o_mask, params, *, batch_block=None):
    """Pallas GraphAttentionK.

    q: (B, D), k/v: (B, N, D), adj/s_mask/o_mask: (B, N).
    params: lin_w (1, 2D), lin_b (1,), wr0_t (D, D), wr1_t (D, D)
            (wr*_t are the PyTorch Wr*.weight already transposed).
    Returns (attn_weight (B, 1, N), attn_sum (B, D)) matching the module.

    batch_block: optional batch tile size; the default (full batch, grid=(1,))
    is best at small sizes.  At production sizes use a (8,128)-aligned batch
    block so the "parallel" grid axis shards the batch across TensorCores
    (v7x megacore).
    """
    b, n, d = k.shape
    bb = b if batch_block is None else batch_block
    grid = (pl.cdiv(b, bb),)

    f32 = lambda x: x.astype(jnp.float32)
    # Pre-split the attention projection weight and pack Wr0^T / Wr1^T on host.
    wq = f32(params["lin_w"][:, :d])                           # (1, D)
    wk = f32(params["lin_w"][:, d:])                           # (1, D)
    bias = f32(params["lin_b"]).reshape(1, 1)                  # (1, 1)
    wr = jnp.concatenate([f32(params["wr0_t"]), f32(params["wr1_t"])], axis=0)

    attn, out = pl.pallas_call(
        _graph_attention_k_kernel,
        out_shape=(jax.ShapeDtypeStruct((b, n), jnp.float32),
                   jax.ShapeDtypeStruct((b, d), jnp.float32)),
        grid=grid,
        in_specs=[
            pl.BlockSpec((bb, d), lambda i: (i, 0)),           # Q
            pl.BlockSpec((bb, n, d), lambda i: (i, 0, 0)),     # K
            pl.BlockSpec((bb, n, d), lambda i: (i, 0, 0)),     # V
            pl.BlockSpec((bb, n), lambda i: (i, 0)),           # adj
            pl.BlockSpec((bb, n), lambda i: (i, 0)),           # s_mask
            pl.BlockSpec((bb, n), lambda i: (i, 0)),           # o_mask
            pl.BlockSpec((1, d), lambda i: (0, 0)),            # wq
            pl.BlockSpec((1, d), lambda i: (0, 0)),            # wk
            pl.BlockSpec((1, 1), lambda i: (0, 0)),            # bias
            pl.BlockSpec((2 * d, d), lambda i: (0, 0)),        # [Wr0^T; Wr1^T]
        ],
        out_specs=(pl.BlockSpec((bb, n), lambda i: (i, 0)),
                   pl.BlockSpec((bb, d), lambda i: (i, 0))),
        compiler_params=pltpu.CompilerParams(
            dimension_semantics=("parallel",)),
    )(f32(q), f32(k), f32(v), f32(adj), f32(s_mask), f32(o_mask),
      wq, wk, bias, wr)

    return attn[:, None, :], out                               # (B,1,N), (B,D)


# ----------------------------------------------------------------------------
# Plain-JAX reference (mirrors the PyTorch module, eval mode)
# ----------------------------------------------------------------------------
def _reference(q, k, v, adj, s_mask, o_mask, params):
    b, n, d = k.shape
    qe = jnp.broadcast_to(q[:, None, :], (b, n, d))
    x = jnp.concatenate([qe, k], axis=-1)                      # (B, N, 2D)
    alpha = x @ params["lin_w"][0] + params["lin_b"][0]        # (B, N)
    alpha = alpha - (1.0 - adj) * 1e30                         # mask_logic assumption
    attn = jax.nn.softmax(alpha, axis=-1)
    v0 = v @ params["wr0_t"]
    v1 = v @ params["wr1_t"]
    vm = v0 * s_mask[..., None] + v1 * o_mask[..., None]
    attn_sum = jnp.einsum("bn,bnd->bd", attn, vm)
    return attn[:, None, :], attn_sum


# ----------------------------------------------------------------------------
if __name__ == "__main__":
    key = jax.random.PRNGKey(0)
    ks = jax.random.split(key, 9)

    B, N, D = 2, 8, 32                                         # batch, neighbors, hidden

    q = jax.random.normal(ks[0], (B, D), jnp.float32)
    k = jax.random.normal(ks[1], (B, N, D), jnp.float32)
    v = jax.random.normal(ks[2], (B, N, D), jnp.float32)
    adj = (jax.random.uniform(ks[3], (B, N)) > 0.4).astype(jnp.float32)
    adj = adj.at[:, 0].set(1.0)                                # >=1 valid neighbor per row
    spk = jax.random.randint(ks[4], (B, N), 0, 2, dtype=jnp.int32)
    s_mask = (spk == 0).astype(jnp.float32)
    o_mask = 1.0 - s_mask

    params = {
        "lin_w": 0.05 * jax.random.normal(ks[5], (1, 2 * D), jnp.float32),
        "lin_b": 0.05 * jax.random.normal(ks[6], (1,), jnp.float32),
        "wr0_t": 0.05 * jax.random.normal(ks[7], (D, D), jnp.float32),
        "wr1_t": 0.05 * jax.random.normal(ks[8], (D, D), jnp.float32),
    }

    attn_w, attn_sum = graph_attention_k(q, k, v, adj, s_mask, o_mask, params)
    jax.block_until_ready((attn_w, attn_sum))

    ref_attn, ref_sum = _reference(q, k, v, adj, s_mask, o_mask, params)
    assert attn_w.shape == (B, 1, N) and attn_sum.shape == (B, D)
    assert jnp.allclose(attn_w, ref_attn, atol=1e-5, rtol=1e-4)
    assert jnp.allclose(attn_sum, ref_sum, atol=1e-5, rtol=1e-4)
    print("KERNEL_OK")
</pallas_src>

<mosaic_0001>
module attributes {stable_mosaic.version = 11 : i64} {
  func.func @_graph_attention_k_kernel(%arg0: i32, %arg1: memref<2x32xf32, #tpu.memory_space<vmem>>, %arg2: memref<2x8x32xf32, #tpu.memory_space<vmem>>, %arg3: memref<2x8x32xf32, #tpu.memory_space<vmem>>, %arg4: memref<2x8xf32, #tpu.memory_space<vmem>>, %arg5: memref<2x8xf32, #tpu.memory_space<vmem>>, %arg6: memref<2x8xf32, #tpu.memory_space<vmem>>, %arg7: memref<1x32xf32, #tpu.memory_space<vmem>>, %arg8: memref<1x32xf32, #tpu.memory_space<vmem>>, %arg9: memref<1x1xf32, #tpu.memory_space<vmem>>, %arg10: memref<64x32xf32, #tpu.memory_space<vmem>>, %arg11: memref<2x8xf32, #tpu.memory_space<vmem>>, %arg12: memref<2x32xf32, #tpu.memory_space<vmem>>) attributes {dimension_semantics = [#tpu.dimension_semantics<parallel>], iteration_bounds = array<i64: 1>, scalar_prefetch = 0 : i64, scratch_operands = 0 : i64, tpu.core_type = #tpu.core_type<tc>, window_params = [{transform_indices = @transform_0, window_bounds = array<i64: 2, 32>}, {transform_indices = @transform_1, window_bounds = array<i64: 2, 8, 32>}, {transform_indices = @transform_2, window_bounds = array<i64: 2, 8, 32>}, {transform_indices = @transform_3, window_bounds = array<i64: 2, 8>}, {transform_indices = @transform_4, window_bounds = array<i64: 2, 8>}, {transform_indices = @transform_5, window_bounds = array<i64: 2, 8>}, {pipeline_mode = #tpu.pipeline_mode<synchronous>, transform_indices = @transform_6, window_bounds = array<i64: 1, 32>}, {pipeline_mode = #tpu.pipeline_mode<synchronous>, transform_indices = @transform_7, window_bounds = array<i64: 1, 32>}, {pipeline_mode = #tpu.pipeline_mode<synchronous>, transform_indices = @transform_8, window_bounds = array<i64: 1, 1>}, {pipeline_mode = #tpu.pipeline_mode<synchronous>, transform_indices = @transform_9, window_bounds = array<i64: 64, 32>}, {transform_indices = @transform_10, window_bounds = array<i64: 2, 8>}, {transform_indices = @transform_11, window_bounds = array<i64: 2, 32>}]} {
    %c0 = arith.constant 0 : index
    %c0_0 = arith.constant 0 : index
    %0 = vector.load %arg1[%c0, %c0_0] : memref<2x32xf32, #tpu.memory_space<vmem>>, vector<2x32xf32>
    %c0_1 = arith.constant 0 : index
    %c0_2 = arith.constant 0 : index
    %c0_3 = arith.constant 0 : index
    %1 = vector.load %arg2[%c0_1, %c0_2, %c0_3] : memref<2x8x32xf32, #tpu.memory_space<vmem>>, vector<2x8x32xf32>
    %c0_4 = arith.constant 0 : index
    %c0_5 = arith.constant 0 : index
    %c0_6 = arith.constant 0 : index
    %2 = vector.load %arg3[%c0_4, %c0_5, %c0_6] : memref<2x8x32xf32, #tpu.memory_space<vmem>>, vector<2x8x32xf32>
    %c0_7 = arith.constant 0 : index
    %c0_8 = arith.constant 0 : index
    %3 = vector.load %arg7[%c0_7, %c0_8] : memref<1x32xf32, #tpu.memory_space<vmem>>, vector<1x32xf32>
    %4 = vector.broadcast %3 : vector<1x32xf32> to vector<2x32xf32>
    %5 = arith.mulf %0, %4 : vector<2x32xf32>
    %cst = arith.constant dense<0.000000e+00> : vector<2xf32>
    %6 = vector.multi_reduction <add>, %5, %cst [1] : vector<2x32xf32> to vector<2xf32>
    %7 = vector.shape_cast %6 : vector<2xf32> to vector<2x1xf32>
    %c0_9 = arith.constant 0 : index
    %c0_10 = arith.constant 0 : index
    %8 = vector.load %arg8[%c0_9, %c0_10] : memref<1x32xf32, #tpu.memory_space<vmem>>, vector<1x32xf32>
    %9 = vector.shape_cast %8 : vector<1x32xf32> to vector<1x1x32xf32>
    %10 = vector.broadcast %9 : vector<1x1x32xf32> to vector<2x8x32xf32>
    %11 = arith.mulf %1, %10 : vector<2x8x32xf32>
    %cst_11 = arith.constant dense<0.000000e+00> : vector<2x8xf32>
    %12 = vector.multi_reduction <add>, %11, %cst_11 [2] : vector<2x8x32xf32> to vector<2x8xf32>
    %13 = vector.broadcast %7 : vector<2x1xf32> to vector<2x8xf32>
    %14 = arith.addf %13, %12 : vector<2x8xf32>
    %c0_12 = arith.constant 0 : index
    %c0_13 = arith.constant 0 : index
    %15 = vector.load %arg9[%c0_12, %c0_13] : memref<1x1xf32, #tpu.memory_space<vmem>>, vector<1x1xf32>
    %16 = vector.broadcast %15 : vector<1x1xf32> to vector<2x8xf32>
    %17 = arith.addf %14, %16 : vector<2x8xf32>
    %c0_14 = arith.constant 0 : index
    %c0_15 = arith.constant 0 : index
    %18 = vector.load %arg4[%c0_14, %c0_15] : memref<2x8xf32, #tpu.memory_space<vmem>>, vector<2x8xf32>
    %cst_16 = arith.constant 1.000000e+00 : f32
    %19 = vector.broadcast %cst_16 : f32 to vector<2x8xf32>
    %20 = arith.subf %19, %18 : vector<2x8xf32>
    %cst_17 = arith.constant 1.000000e+30 : f32
    %21 = vector.broadcast %cst_17 : f32 to vector<2x8xf32>
    %22 = arith.mulf %20, %21 : vector<2x8xf32>
    %23 = arith.subf %17, %22 : vector<2x8xf32>
    %cst_18 = arith.constant dense<0xFF800000> : vector<2xf32>
    %24 = vector.multi_reduction <maximumf>, %23, %cst_18 [1] : vector<2x8xf32> to vector<2xf32>
    %25 = vector.shape_cast %24 : vector<2xf32> to vector<2x1xf32>
    %26 = vector.broadcast %25 : vector<2x1xf32> to vector<2x8xf32>
    %27 = arith.subf %23, %26 : vector<2x8xf32>
    %28 = math.exp %27 : vector<2x8xf32>
    %cst_19 = arith.constant dense<0.000000e+00> : vector<2xf32>
    %29 = vector.multi_reduction <add>, %28, %cst_19 [1] : vector<2x8xf32> to vector<2xf32>
    %30 = vector.shape_cast %29 : vector<2xf32> to vector<2x1xf32>
    %31 = vector.broadcast %30 : vector<2x1xf32> to vector<2x8xf32>
    %32 = arith.divf %28, %31 : vector<2x8xf32>
    %c0_20 = arith.constant 0 : index
    %c0_21 = arith.constant 0 : index
    %33 = vector.load %arg11[%c0_20, %c0_21] : memref<2x8xf32, #tpu.memory_space<vmem>>, vector<2x8xf32>
    tpu.vector_store %arg11[%c0_20, %c0_21], %32 {strides = array<i32>} : memref<2x8xf32, #tpu.memory_space<vmem>>, vector<2x8xf32>,
    %c0_22 = arith.constant 0 : index
    %c0_23 = arith.constant 0 : index
    %34 = vector.load %arg5[%c0_22, %c0_23] : memref<2x8xf32, #tpu.memory_space<vmem>>, vector<2x8xf32>
    %35 = arith.mulf %32, %34 : vector<2x8xf32>
    %36 = vector.shape_cast %35 : vector<2x8xf32> to vector<2x8x1xf32>
    %c0_24 = arith.constant 0 : index
    %c0_25 = arith.constant 0 : index
    %37 = vector.load %arg6[%c0_24, %c0_25] : memref<2x8xf32, #tpu.memory_space<vmem>>, vector<2x8xf32>
    %38 = arith.mulf %32, %37 : vector<2x8xf32>
    %39 = vector.shape_cast %38 : vector<2x8xf32> to vector<2x8x1xf32>
    %40 = vector.broadcast %36 : vector<2x8x1xf32> to vector<2x8x32xf32>
    %41 = arith.mulf %40, %2 : vector<2x8x32xf32>
    %cst_26 = arith.constant dense<0.000000e+00> : vector<2x32xf32>
    %42 = vector.multi_reduction <add>, %41, %cst_26 [1] : vector<2x8x32xf32> to vector<2x32xf32>
    %43 = vector.broadcast %39 : vector<2x8x1xf32> to vector<2x8x32xf32>
    %44 = arith.mulf %43, %2 : vector<2x8x32xf32>
    %cst_27 = arith.constant dense<0.000000e+00> : vector<2x32xf32>
    %45 = vector.multi_reduction <add>, %44, %cst_27 [1] : vector<2x8x32xf32> to vector<2x32xf32>
    %46 = tpu.concatenate %42, %45 in 1 : vector<2x32xf32>, vector<2x32xf32> -> vector<2x64xf32>
    %c0_28 = arith.constant 0 : index
    %c0_29 = arith.constant 0 : index
    %47 = vector.load %arg10[%c0_28, %c0_29] : memref<64x32xf32, #tpu.memory_space<vmem>>, vector<64x32xf32>
    %cst_30 = arith.constant dense<0.000000e+00> : vector<2x32xf32>
    %48 = tpu.matmul %46, %47, %cst_30 {dimension_numbers = #tpu.dot_dimension_numbers<[1], [0], [0], [1], [0, 0, 1, 1], [], []>} : vector<2x64xf32>, vector<64x32xf32>, vector<2x32xf32> -> vector<2x32xf32>
    %c0_31 = arith.constant 0 : index
    %c0_32 = arith.constant 0 : index
    %49 = vector.load %arg12[%c0_31, %c0_32] : memref<2x32xf32, #tpu.memory_space<vmem>>, vector<2x32xf32>
    tpu.vector_store %arg12[%c0_31, %c0_32], %48 {strides = array<i32>} : memref<2x32xf32, #tpu.memory_space<vmem>>, vector<2x32xf32>,
    return
  }
  func.func @transform_0(%arg0: i32) -> (i32, i32) {
    %c0_i32 = arith.constant 0 : i32
    %c0_i32_0 = arith.constant 0 : i32
    return %arg0, %c0_i32 : i32, i32
  }
  func.func @transform_1(%arg0: i32) -> (i32, i32, i32) {
    %c0_i32 = arith.constant 0 : i32
    %c0_i32_0 = arith.constant 0 : i32
    %c0_i32_1 = arith.constant 0 : i32
    return %arg0, %c0_i32, %c0_i32_0 : i32, i32, i32
  }
  func.func @transform_2(%arg0: i32) -> (i32, i32, i32) {
    %c0_i32 = arith.constant 0 : i32
    %c0_i32_0 = arith.constant 0 : i32
    %c0_i32_1 = arith.constant 0 : i32
    return %arg0, %c0_i32, %c0_i32_0 : i32, i32, i32
  }
  func.func @transform_3(%arg0: i32) -> (i32, i32) {
    %c0_i32 = arith.constant 0 : i32
    %c0_i32_0 = arith.constant 0 : i32
    return %arg0, %c0_i32 : i32, i32
  }
  func.func @transform_4(%arg0: i32) -> (i32, i32) {
    %c0_i32 = arith.constant 0 : i32
    %c0_i32_0 = arith.constant 0 : i32
    return %arg0, %c0_i32 : i32, i32
  }
  func.func @transform_5(%arg0: i32) -> (i32, i32) {
    %c0_i32 = arith.constant 0 : i32
    %c0_i32_0 = arith.constant 0 : i32
    return %arg0, %c0_i32 : i32, i32
  }
  func.func @transform_6(%arg0: i32) -> (i32, i32) {
    %c0_i32 = arith.constant 0 : i32
    %c0_i32_0 = arith.constant 0 : i32
    %c0_i32_1 = arith.constant 0 : i32
    return %c0_i32, %c0_i32_0 : i32, i32
  }
  func.func @transform_7(%arg0: i32) -> (i32, i32) {
    %c0_i32 = arith.constant 0 : i32
    %c0_i32_0 = arith.constant 0 : i32
    %c0_i32_1 = arith.constant 0 : i32
    return %c0_i32, %c0_i32_0 : i32, i32
  }
  func.func @transform_8(%arg0: i32) -> (i32, i32) {
    %c0_i32 = arith.constant 0 : i32
    %c0_i32_0 = arith.constant 0 : i32
    %c0_i32_1 = arith.constant 0 : i32
    return %c0_i32, %c0_i32_0 : i32, i32
  }
  func.func @transform_9(%arg0: i32) -> (i32, i32) {
    %c0_i32 = arith.constant 0 : i32
    %c0_i32_0 = arith.constant 0 : i32
    %c0_i32_1 = arith.constant 0 : i32
    return %c0_i32, %c0_i32_0 : i32, i32
  }
  func.func @transform_10(%arg0: i32) -> (i32, i32) {
    %c0_i32 = arith.constant 0 : i32
    %c0_i32_0 = arith.constant 0 : i32
    return %arg0, %c0_i32 : i32, i32
  }
  func.func @transform_11(%arg0: i32) -> (i32, i32) {
    %c0_i32 = arith.constant 0 : i32
    %c0_i32_0 = arith.constant 0 : i32
    return %arg0, %c0_i32 : i32, i32
  }
}

</mosaic_0001>

<bundles_post_ra>
// kernel: tpu_custom_call.1
= control target key start
LH: loop header
LB: loop body
LE: loop exit
PB: predicated region body
PF: predicated region fallthrough
CT: control target
= control target key end

     0   :  { %s572_s0 = inlined_call_operand.vmem [shape: f32[2,32], index: 0, kind: input, shape index: {}]   ;;  %s573_s1 = inlined_call_operand.vmem [shape: f32[2,8,32], index: 1, kind: input, shape index: {}]   ;;  %s574_s2 = inlined_call_operand.vmem [shape: f32[2,8,32], index: 2, kind: input, shape index: {}]   ;;  %s575_s3 = inlined_call_operand.vmem [shape: f32[2,8], index: 3, kind: input, shape index: {}]   ;;  %s576_s4 = inlined_call_operand.vmem [shape: f32[2,8], index: 4, kind: input, shape index: {}]   ;;  %s577_s5 = inlined_call_operand.vmem [shape: f32[2,8], index: 5, kind: input, shape index: {}]   ;;  %s578_s6 = inlined_call_operand.vmem [shape: f32[1,32], index: 6, kind: input, shape index: {}]   ;;  %s579_s7 = inlined_call_operand.vmem [shape: f32[1,32], index: 7, kind: input, shape index: {}]   ;;  %s580_s8 = inlined_call_operand.<no memory space> [shape: f32[1,1], index: 8, kind: input, shape index: {}]   ;;  %s581_s9 = inlined_call_operand.vmem [shape: f32[64,32], index: 9, kind: input, shape index: {}]   ;;  %s582_s10 = inlined_call_operand.hbm [shape: f32[2,8], index: 10, kind: output, shape index: {0}]   ;;  %s583_s11 = inlined_call_operand.hbm [shape: f32[2,32], index: 11, kind: output, shape index: {1}]  }
   0x1   :  { %v17_v0 = vstv %s580_s8 }
   0x2   :  { %18 = vst [vmem:[#allocation2] sm:$0x1] %v17_v0 }
   0x3   :  { %19 = vsyncpa [#allocation4], 0  ;;  %v42_v1 = vld [vmem:[%s573_s1] sm:$0xff]  ;;  %vm67_vm0 = vcmask 261120   ;;  %v43_v3 = vld [vmem:[%s573_s1 + $0x8] sm:$0xff]  ;;  %vm54_vm1 = vcmask 254976  }
   0x4   :  { %v305_v2 = vld [vmem:[%s579_s7] ss:$0 sm:$0xff]  ;;  %v409_v9 = vmov 0  }
   0x5   :  { %v65_v4 = vmul.f32 %v305_v2, %v42_v1  ;;  %v66_v5 = vmul.f32 %v305_v2, %v43_v3  ;;  %v41_v6 = vld [vmem:[%s572_s0] sm:$0x3]  ;;  %355 = vset.pattern.permute.xlu1 %v409_v9  ;;  %356 = vset.pattern.permute.xlu0 %v409_v9 }
   0x6   :  { %v304_v7 = vld [vmem:[%s578_s6] ss:$0 sm:$0xff] }
   0x7   :  { %v53_v8 = vmul.f32 %v304_v7, %v41_v6 }
   0x8   :  { %20 = vsyncpa [#allocation6], 0  ;;  %v68_v10 = vsel %vm67_vm0, %v65_v4, 0.0  ;;  %v71_v12 = vsel %vm67_vm0, %v66_v5, 0.0  ;;  %v76_v14 = vlaneseq  ;;  %v101_v20 = vld [vmem:[%s575_s3] sm:$0x3] }
   0x9   :  { %69 = vadd.xlane.f32.xlu0 %v68_v10  ;;  %v55_v11 = vsel %vm54_vm1, %v53_v8, 0.0  ;;  %v306_v13 = vld [vmem:[#allocation2] ss:$0 sm:$0xff]  ;;  %vm86_vm2 = vcmask 1041409   ;;  %v102_v22 = vsub.f32 1.0, %v101_v20  ;;  %vm105_vm3 = vcmask 58368  }
   0xa   :  { %56 = vadd.xlane.f32.xlu1 %v55_v11  ;;  %v77_v15 = vand.u32 127, %v76_v14  ;;  %v79_v16 = vshrl.u32 %v76_v14, 7  ;;  %v134_v39 = vld [vmem:[%s577_s5] sm:$0x3]  ;;  %v194_v51 = vld [vmem:[%s581_s9 + $0x8] sm:$0xff]  ;;  %v195_v52 = vld [vmem:[%s581_s9 + $0x10] sm:$0xff] }
   0xb   :  { %v103_v28 = vmul.f32 1e+30, %v102_v22  ;;  %v118_v43 = vld [vmem:[%s576_s4] sm:$0x3]  ;;  %v410_v53 = vmov 0.0|0.0   ;;  %v196_v55 = vld [vmem:[%s581_s9 + $0x18] sm:$0xff] }
   0xc   :  { %v80_v18 = vsub.s32 %v77_v15, %v79_v16  ;;  %v129_v41 = vsub.s32 1, %v79_v16  ;;  %v122_v42 = vsub.s32 0, %v79_v16  ;;  %v193_v50 = vld [vmem:[%s581_s9] sm:$0xff]  ;;  %336 = vmatprep.subr.bf16.mxu0 %v410_v53  ;;  %v340_v56 = vpack.c.bf16 %v196_v55, %v195_v52  ;;  %v198_v58 = vld [vmem:[%s581_s9 + $0x28] sm:$0xff]  ;;  %v199_v60 = vld [vmem:[%s581_s9 + $0x30] sm:$0xff] }
   0xd   :  { %72 = vadd.xlane.f32.xlu0 %v71_v12  ;;  %v337_v54 = vpack.c.bf16 %v194_v51, %v193_v50  ;;  %v197_v57 = vld [vmem:[%s581_s9 + $0x20] sm:$0xff]  ;;  %v200_v61 = vld [vmem:[%s581_s9 + $0x38] sm:$0xff]  ;;  %v45_v63 = vld [vmem:[%s574_s2 + $0x8] sm:$0xff]  ;;  %vm411_vm4 = vmmov 0   ;;  %v412_v10 = vmov 0.0   ;;  %vm201_vm5 = vcmask 523264  }
   0xe   :  { %v343_v59 = vpack.c.bf16 %v198_v58, %v197_v57  ;;  %v346_v62 = vpack.c.bf16 %v200_v61, %v199_v60  ;;  %v44_v0 = vld [vmem:[%s574_s2] sm:$0xff]  ;;  %333 = vmatprep.mubr.msk.f32.mxu0 %vm411_vm4, %v412_v10  ;;  %s413_s2 = smov 32   ;;  %s414_s9 = smov [#allocation3]  }
   0xf   :  { %338 = vmatpush3.bf16.msra.mxu0 %v337_v54  ;;  %s282_s27 = sshll.u32 %s414_s9, 4  ;;  %s283_s27 = int_to_ptr.vmem [resolvable:$true] %s282_s27 }
  0x10   :  { %339 = vmatprep.subr.bf16.mxu0 %v410_v53  ;;  %s361_s0 = scalar_lea.vmem %s283_s27, 32  ;;  %p366_p1 = scmp.lt.s32.totalorder %s283_s27, %s283_s27 }
  0x11   :  { %p362_p0 = scmp.ne.s32.totalorder %s283_s27, %s361_s0  ;;  %p367_p2 = scmp.lt.s32.totalorder %s361_s0, %s361_s0 }
  0x13   :  { %341 = vmatpush3.bf16.msra.mxu0 %v340_v56  ;;  %p368_p3 = por %p367_p2, %p366_p1 }
  0x14   :  { %342 = vmatprep.subr.bf16.mxu0 %v410_v53 }
  0x15   :  { %p369_p4 = pnand %p368_p3, %p362_p0 }
  0x17   :  { %344 = vmatpush3.bf16.msra.mxu0 %v343_v59 }
  0x18   :  { %345 = vmatprep.subr.bf16.mxu0 %v410_v53 }
  0x1b   :  { %97 = vperm.xlu1 %355, %v306_v13   ;;  %347 = vmatpush3.bf16.msra.mxu0 %v346_v62 }
  0x96   :  { %v70_v17 = vpop.xlane.xlu0 %69 }
  0x97   :  { %v57_v19 = vpop.xlane.xlu1 %56  ;;  %v81_v23 = vrot.slane %v70_v17, %v80_v18 }
  0x9a   :  { %v73_v21 = vpop.xlane.xlu0 %72 }
  0x9b   :  { %v85_v24 = vrot.slane %v73_v21, %v80_v18  ;;  %v98_v26 = vpop.permute.xlu1 %97 }
  0x9d   :  { %v87_v25 = vsel %vm86_vm2, %v85_v24, %v81_v23 }
  0x9e   :  { %v89_v27 = vadd.f32 %v87_v25, %v57_v19 }
  0xa0   :  { %v100_v29 = vadd.f32 %v98_v26, %v89_v27 }
  0xa2   :  { %v104_v30 = vsub.f32 %v100_v29, %v103_v28 }
  0xa4   :  { %v106_v31 = vsel %vm105_vm3, %v104_v30, -inf }
  0xa5   :  { %107 = vmax.xlane.f32.xlu0 %v106_v31 }
 0x132   :  { %v108_v32 = vpop.xlane.xlu0 %107 }
 0x133   :  { %v109_v33 = vsub.f32 %v104_v30, %v108_v32 }
 0x135   :  { %v110_v34 = vmul.f32 1.442695, %v109_v33 }
 0x137   :  { %357 = vpow2.f32 %v110_v34 }
 0x141   :  { %v358_v35 = vpop.eup %357 }
 0x142   :  { %v112_v36 = vsel %vm105_vm3, %v358_v35, 0.0 }
 0x143   :  { %113 = vadd.xlane.f32.xlu0 %v112_v36 }
 0x1d0   :  { %v114_v37 = vpop.xlane.xlu0 %113 }
 0x1d1   :  { %359 = vrcp.f32 %v114_v37 }
 0x1db   :  { %v360_v38 = vpop.eup %359 }
 0x1dc   :  { %v116_v40 = vmul.f32 %v360_v38, %v358_v35 }
 0x1de   :  { %v135_v44 = vmul.f32 %v134_v39, %v116_v40  ;;  %117 = vst.msk [vmem:[#allocation3] sm:$0x3] %vm105_vm3, %v116_v40  ;;  %v119_v47 = vmul.f32 %v118_v43, %v116_v40 }
 0x1e0   :  { %v146_v45 = vrot.slane %v135_v44, %v129_v41  ;;  %v139_v46 = vrot.slane %v135_v44, %v122_v42  ;;  %v123_v48 = vrot.slane %v119_v47, %v122_v42  ;;  %v130_v49 = vrot.slane %v119_v47, %v129_v41 }
 0x1e2   :  { %148 = vbcast.lane.b32.xlu1 %v146_v45, 256  ;;  %141 = vbcast.lane.b32.xlu0 %v139_v46, 256 }
 0x1e6   :  { %125 = vbcast.lane.b32.xlu1 %v123_v48, 256 }
 0x1ea   :  { %132 = vbcast.lane.b32.xlu1 %v130_v49, 256 }
 0x254   :  { %v149_v1 = vpop.permute.xlu1 %148  ;;  %v142_v2 = vpop.permute.xlu0 %141 }
 0x255   :  { %v167_v3 = vmul.f32 %v149_v1, %v45_v63  ;;  %v166_v4 = vmul.f32 %v142_v2, %v44_v0 }
 0x257   :  { %v175_v5 = vsel %vm67_vm0, %v167_v3, 0.0  ;;  %v168_v6 = vsel %vm67_vm0, %v166_v4, 0.0 }
 0x258   :  { %v176_v7 = vrot.slane %v175_v5, 4  ;;  %v169_v8 = vrot.slane %v168_v6, 4  ;;  %v126_v9 = vpop.permute.xlu1 %125 }
 0x259   :  { %v150_v11 = vmul.f32 %v126_v9, %v44_v0 }
 0x25a   :  { %v177_v12 = vadd.f32 %v176_v7, %v175_v5  ;;  %v170_v13 = vadd.f32 %v169_v8, %v168_v6 }
 0x25b   :  { %v152_v14 = vsel %vm67_vm0, %v150_v11, 0.0 }
 0x25c   :  { %v178_v15 = vrot.slane %v177_v12, 2  ;;  %v171_v16 = vrot.slane %v170_v13, 2  ;;  %v153_v17 = vrot.slane %v152_v14, 4  ;;  %v133_v18 = vpop.permute.xlu1 %132 }
 0x25d   :  { %v151_v19 = vmul.f32 %v133_v18, %v45_v63 }
 0x25e   :  { %v179_v20 = vadd.f32 %v178_v15, %v177_v12  ;;  %v172_v21 = vadd.f32 %v171_v16, %v170_v13  ;;  %v154_v22 = vadd.f32 %v153_v17, %v152_v14 }
 0x25f   :  { %v159_v23 = vsel %vm67_vm0, %v151_v19, 0.0 }
 0x260   :  { %v180_v24 = vrot.slane %v179_v20, 1  ;;  %v173_v25 = vrot.slane %v172_v21, 1  ;;  %v155_v26 = vrot.slane %v154_v22, 2  ;;  %v160_v27 = vrot.slane %v159_v23, 4 }
 0x262   :  { %v156_v28 = vadd.f32 %v155_v26, %v154_v22  ;;  %v161_v29 = vadd.f32 %v160_v27, %v159_v23  ;;  %v174_v30 = vadd.f32 %v173_v25, %v172_v21  ;;  %v181_v31 = vadd.f32 %v180_v24, %v179_v20 }
 0x264   :  { %v162_v32 = vrot.slane %v161_v29, 2  ;;  %v188_v33 = vsel %vm86_vm2, %v181_v31, %v174_v30  ;;  %v157_v34 = vrot.slane %v156_v28, 1 }
 0x265   :  { %189 = vrot.lane.b32.xlu1 %v188_v33, %s413_s2 }
 0x266   :  { %v163_v35 = vadd.f32 %v162_v32, %v161_v29  ;;  %v158_v37 = vadd.f32 %v157_v34, %v156_v28 }
 0x268   :  { %v164_v36 = vrot.slane %v163_v35, 1 }
 0x26a   :  { %v165_v38 = vadd.f32 %v164_v36, %v163_v35 }
 0x26c   :  { %v184_v39 = vsel %vm86_vm2, %v165_v38, %v158_v37 }
 0x2d7   :  { %v190_v40 = vpop.permute.xlu1 %189 }
 0x2d8   :  { %v192_v41 = vsel %vm67_vm0, %v184_v39, %v190_v40 }
 0x2d9   :  { %334 = vmatmul.mubr.msk.f32.vlgmr.msra.gmra.mrb[0].mxu0 %vm201_vm5, %v192_v41 }
 0x2da   :  { %372 = shalt.err (!%p369_p4)
}
 0x2db   :  { %s373_s6 = scalar_lea.hbm %s582_s10, 32 }
 0x2dc   :  { %p374_p5 = scmp.ne.s32.totalorder %s582_s10, %s373_s6  ;;  %p377_p6 = scmp.lt.u32.totalorder %s373_s6, %s582_s10 }
 0x2de   :  { %p379_p7 = pnand %p377_p6, %p374_p5 }
 0x2e0   :  { %382 = shalt.err (!%p379_p7)
}
 0x2e1   :  { %285 = dma.vmem_to_hbm [thread:$0]  %s283_s27, 32, %s582_s10, [#allocation4]  }
 0x2e2   :  { %s415_s4 = smov [#allocation5]  }
 0x2e3   :  { %s292_s13 = sshll.u32 %s415_s4, 4  ;;  %s293_s13 = int_to_ptr.vmem [resolvable:$true] %s292_s13 }
 0x2e4   :  { %s383_s14 = scalar_lea.vmem %s293_s13, 32  ;;  %p388_p9 = scmp.lt.s32.totalorder %s293_s13, %s293_s13 }
 0x2e5   :  { %p384_p8 = scmp.ne.s32.totalorder %s293_s13, %s383_s14  ;;  %p389_p10 = scmp.lt.s32.totalorder %s383_s14, %s383_s14 }
 0x2e7   :  { %p390_p11 = por %p389_p10, %p388_p9 }
 0x2e9   :  { %p391_p12 = pnand %p390_p11, %p384_p8 }
 0x3ac   :  { %v271_v42 = vpop.f32.mrb[0].mxu0 }
 0x3ad   :  { %275 = vst.msk [vmem:[#allocation5] sm:$0x3] %vm54_vm1, %v271_v42  ;;  %v335_v43 = vpop.f32.mrb[1].mxu0 }
 0x3ae   :  { %394 = shalt.err (!%p391_p12)
}
 0x3af   :  { %s395_s17 = scalar_lea.hbm %s583_s11, 32 }
 0x3b0   :  { %p396_p13 = scmp.ne.s32.totalorder %s583_s11, %s395_s17  ;;  %p399_p0 = scmp.lt.u32.totalorder %s395_s17, %s583_s11 }
 0x3b2   :  { %p401_p1 = pnand %p399_p0, %p396_p13 }
 0x3b4   :  { %404 = shalt.err (!%p401_p1)
}
 0x3b5   :  { %295 = dma.vmem_to_hbm [thread:$0]  %s293_s13, 32, %s583_s11, [#allocation6]  }
 0x3b6   :  { %405 = dma.done.wait [#allocation4], 32  }
 0x3b7   :  { %406 = vsyncadd [#allocation4], 4294967264 }
 0x3b8   :  { %407 = dma.done.wait [#allocation6], 32  }
 0x3b9   :  { %408 = vsyncadd [#allocation6], 4294967264 }
 0x3ba   :  { %302 = vsyncpa [#allocation4], 1 }
 0x3bb   :  { %303 = vsyncpa [#allocation6], 1 }

</bundles_post_ra>
